<compile_context>
chip_gen: v7x
topology: tpu7x:2x2x1
jax: 0.10.0
libtpu: 0.0.40
codegen_flags: <defaults>
</compile_context>

<pallas_src>
import functools

import jax
import jax.numpy as jnp
from jax import lax
from jax.experimental import pallas as pl
from jax.experimental.pallas import tpu as pltpu

EPS = 1e-6


def _lm_head_topk_kernel(gamma_ref, x_ref, w_ref, out_ref,
                         normed_ref, max_ref, idx_ref, *, vocab_size, tv):
    j = pl.program_id(1)
    last_j = pl.num_programs(1) - 1

    @pl.when(j == 0)
    def _():
        # RMSNorm in f32 once per row tile; store bf16 rows for the MXU.
        x = x_ref[...].astype(jnp.float32)
        ms = jnp.mean(x * x, axis=-1, keepdims=True)
        inv = lax.rsqrt(ms + EPS)
        normed = x * inv * gamma_ref[...].astype(jnp.float32)
        normed_ref[...] = normed.astype(normed_ref.dtype)
        # 128-lane-wide running (max, argmax) accumulators.
        max_ref[...] = jnp.full_like(max_ref, -jnp.inf)
        idx_ref[...] = jnp.zeros_like(idx_ref)

    # bf16 x bf16 -> f32 accumulation on the MXU: [tm, H] @ [H, tv]
    logits = jnp.dot(normed_ref[...], w_ref[...],
                     preferred_element_type=jnp.float32)

    tm = logits.shape[0]
    # lane offsets within a 128-wide sub-block (hoisted; reused by all sub-blocks)
    lane = lax.broadcasted_iota(jnp.int32, (tm, 128), 1)

    def _update(mask_cols):
        # Fold the tv/128 sub-blocks of this vocab tile into the fixed
        # [tm, 128] accumulator.  Pure VPU compare/select; no cross-lane work.
        run_max = max_ref[...]
        run_idx = idx_ref[...]
        for sub in range(tv // 128):
            blk = logits[:, sub * 128:(sub + 1) * 128]
            col = lane + (j * tv + sub * 128)
            # Strict '>' keeps the earlier (lower global index) column on ties.
            better = blk > run_max
            if mask_cols:
                # padded / out-of-bounds vocab columns can never win
                better = jnp.logical_and(better, col < vocab_size)
            run_idx = jnp.where(better, col, run_idx)
            run_max = jnp.where(better, blk, run_max)
        max_ref[...] = run_max
        idx_ref[...] = run_idx

    if vocab_size % tv == 0:
        # No ragged tile exists; never pay for the mask.
        _update(False)
    else:
        # Only the last vocab tile is ragged; gate the masking there.
        @pl.when(j != last_j)
        def _():
            _update(False)

        @pl.when(j == last_j)
        def _():
            _update(True)

    @pl.when(j == last_j)
    def _():
        # Single cross-lane reduction (128 lanes) at the end of the vocab scan.
        m = max_ref[...]
        row_max = jnp.max(m, axis=-1, keepdims=True)
        sentinel = jnp.iinfo(jnp.int32).max
        # lowest global index among ties (matches torch/jnp argmax convention)
        out_ref[...] = jnp.min(
            jnp.where(m == row_max, idx_ref[...], sentinel),
            axis=-1, keepdims=True)


def _round_up(x, m):
    return (x + m - 1) // m * m


def _physical_vmem_bytes():
    try:
        info = pltpu.get_tpu_info()
        return int(getattr(info, "vmem_capacity_bytes", 64 * 1024 * 1024))
    except Exception:
        return 64 * 1024 * 1024  # conservative (v7x per-TC VMEM)


def lm_head_with_topk(hidden_states, gamma, w, *, tm=None, tv=None):
    """hidden_states: [B, S, H]; gamma: [H]; w: [H, V] -> token ids [B, S, 1] (int32).

    Pass `w` in bf16 to avoid a per-call f32->bf16 cast of the full weight.
    """
    B, S, H = hidden_states.shape
    assert w.shape[0] == H
    V = w.shape[1]
    R = B * S

    phys_vmem = _physical_vmem_bytes()

    # Chip-aware defaults: stream the [H, V] weight as few times as possible
    # (rows-per-weight-pass at the MXU/HBM roofline knee), within VMEM.
    if tm is None:
        tm = 768 if phys_vmem >= (100 << 20) else 512
    if tv is None:
        tv = 1024

    # Clamp tiles to the problem size while keeping TPU (8, 128) block rules.
    tm = max(8, min(_round_up(tm, 8), _round_up(R, 8)))
    tv = max(128, min(_round_up(tv, 128), _round_up(V, 128)))

    # Explicit VMEM budget (double-buffered inputs + scratch).
    def _budget(tm_, tv_):
        return int(
            2 * tm_ * H * 2          # bf16 hidden-row tiles (double-buffered)
            + 2 * H * 4              # gamma (f32)
            + 2 * H * tv_ * 2        # bf16 weight slabs (double-buffered)
            + 2 * tm_ * 128 * 4      # output tiles (lane-padded, int32)
            + tm_ * H * 2            # bf16 normed scratch
            + 2 * tm_ * 128 * 4)     # running max / argmax accumulators

    headroom = 4 << 20
    cap = int(phys_vmem * 7 // 8)    # never request more than physical VMEM
    # Auto-shrink user/default tiles that would exceed the scoped-VMEM cap.
    while _budget(tm, tv) + headroom > cap and tm > 64:
        tm = max(64, _round_up(tm // 2, 8))
    while _budget(tm, tv) + headroom > cap and tv > 256:
        tv = max(256, _round_up(tv // 2, 128))
    vmem_limit = min(cap, max(32 << 20, _budget(tm, tv) + headroom))

    # bf16 hidden rows (upcast to f32 inside the kernel's RMSNorm).
    x2d = hidden_states.reshape(R, H).astype(jnp.bfloat16)
    # Pad rows to a multiple of 8 so the row block shape is always legal.
    R_pad = _round_up(R, 8)
    if R_pad != R:
        x2d = jnp.pad(x2d, ((0, R_pad - R), (0, 0)))
    gamma2d = gamma.reshape(1, H).astype(jnp.float32)
    # Hoisted weight cast: only pay it if the caller did not supply bf16.
    w_bf16 = w if w.dtype == jnp.bfloat16 else w.astype(jnp.bfloat16)

    grid = (pl.cdiv(R_pad, tm), pl.cdiv(V, tv))

    kernel = functools.partial(_lm_head_topk_kernel, vocab_size=V, tv=tv)

    out = pl.pallas_call(
        kernel,
        out_shape=jax.ShapeDtypeStruct((R_pad, 1), jnp.int32),
        grid_spec=pltpu.PrefetchScalarGridSpec(
            num_scalar_prefetch=0,
            grid=grid,
            in_specs=[
                pl.BlockSpec((1, H), lambda i, j: (0, 0)),   # gamma
                pl.BlockSpec((tm, H), lambda i, j: (i, 0)),  # bf16 hidden rows
                pl.BlockSpec((H, tv), lambda i, j: (0, j)),  # bf16 weight slab
            ],
            out_specs=pl.BlockSpec((tm, 1), lambda i, j: (i, 0)),
            scratch_shapes=[
                pltpu.VMEM((tm, H), jnp.bfloat16),   # normalized rows (bf16)
                pltpu.VMEM((tm, 128), jnp.float32),  # running per-lane max
                pltpu.VMEM((tm, 128), jnp.int32),    # running per-lane argmax
            ],
        ),
        compiler_params=pltpu.CompilerParams(
            dimension_semantics=("parallel", "arbitrary"),
            vmem_limit_bytes=vmem_limit),
    )(gamma2d, x2d, w_bf16)

    return out[:R].reshape(B, S, 1)


def _reference_logits(hidden_states, gamma, w_bf16):
    """Reference logits with the same bf16-input / f32-accumulate numerics."""
    x = hidden_states.astype(jnp.bfloat16).astype(jnp.float32)
    inv = lax.rsqrt(jnp.mean(x * x, axis=-1, keepdims=True) + EPS)
    normed = (x * inv * gamma.astype(jnp.float32)).astype(jnp.bfloat16)
    return jnp.einsum("bsh,hv->bsv", normed, w_bf16,
                      preferred_element_type=jnp.float32)


if __name__ == "__main__":
    # Small shapes; V=640 with tv=256 exercises the multi-step fixed-width
    # accumulator and the gated ragged-vocab masking path (640 % 256 != 0).
    B, S, H, V = 2, 8, 256, 640
    key = jax.random.PRNGKey(0)
    k1, k2, k3 = jax.random.split(key, 3)

    hidden = jax.random.normal(k1, (B, S, H), dtype=jnp.float32)
    gamma = 1.0 + 0.05 * jax.random.normal(k2, (H,), dtype=jnp.float32)   # ln_f weight
    w = 0.02 * jax.random.normal(k3, (H, V), dtype=jnp.float32)           # ff_out weight^T
    w_bf16 = w.astype(jnp.bfloat16)   # cast once, outside the per-call path

    token = lm_head_with_topk(hidden, gamma, w_bf16, tm=16, tv=256)
    jax.block_until_ready(token)
    assert token.shape == (B, S, 1)

    # Also exercise the non-ragged / default-tile path once.
    token_def = lm_head_with_topk(hidden, gamma, w_bf16)
    jax.block_until_ready(token_def)

    # Validate: each selected index must either equal the reference argmax or be
    # a genuine numerical near-tie (bf16 rounding can legally flip near-ties).
    ref_logits = _reference_logits(hidden, gamma, w_bf16).reshape(B * S, V)
    ref_idx = jnp.argmax(ref_logits, axis=-1).astype(jnp.int32)
    for tok in (token, token_def):
        tok_flat = tok.reshape(B * S)
        picked = jnp.take_along_axis(ref_logits, tok_flat[:, None], axis=-1)[:, 0]
        row_max = jnp.max(ref_logits, axis=-1)
        ok = (tok_flat == ref_idx) | (picked >= row_max - 1e-3)
        assert bool(jnp.all(ok))
    print("KERNEL_OK")
</pallas_src>

<mosaic_0001>
module attributes {stable_mosaic.version = 11 : i64} {
  func.func @_lm_head_topk_kernel(%arg0: i32, %arg1: i32, %arg2: memref<1x256xf32, #tpu.memory_space<vmem>>, %arg3: memref<16x256xbf16, #tpu.memory_space<vmem>>, %arg4: memref<256x256xbf16, #tpu.memory_space<vmem>>, %arg5: memref<16x1xi32, #tpu.memory_space<vmem>>, %arg6: memref<16x256xbf16, #tpu.memory_space<vmem>>, %arg7: memref<16x128xf32, #tpu.memory_space<vmem>>, %arg8: memref<16x128xi32, #tpu.memory_space<vmem>>) attributes {dimension_semantics = [#tpu.dimension_semantics<parallel>, #tpu.dimension_semantics<arbitrary>], iteration_bounds = array<i64: 1, 3>, scalar_prefetch = 0 : i64, scratch_operands = 3 : i64, tpu.core_type = #tpu.core_type<tc>, window_params = [{pipeline_mode = #tpu.pipeline_mode<synchronous>, transform_indices = @transform_0, window_bounds = array<i64: 1, 256>}, {transform_indices = @transform_1, window_bounds = array<i64: 16, 256>}, {transform_indices = @transform_2, window_bounds = array<i64: 256, 256>}, {transform_indices = @transform_3, window_bounds = array<i64: 16, 1>}]} {
    %c0_i32 = arith.constant 0 : i32
    %0 = arith.cmpi eq, %arg1, %c0_i32 : i32
    %1 = arith.extui %0 : i1 to i32
    %c0_i32_0 = arith.constant 0 : i32
    %2 = arith.cmpi ne, %1, %c0_i32_0 : i32
    scf.if %2 {
      %c0_9 = arith.constant 0 : index
      %c0_10 = arith.constant 0 : index
      %16 = vector.load %arg3[%c0_9, %c0_10] : memref<16x256xbf16, #tpu.memory_space<vmem>>, vector<16x256xbf16>
      %17 = arith.extf %16 : vector<16x256xbf16> to vector<16x256xf32>
      %18 = arith.mulf %17, %17 : vector<16x256xf32>
      %cst_11 = arith.constant dense<0.000000e+00> : vector<16xf32>
      %19 = vector.multi_reduction <add>, %18, %cst_11 [1] : vector<16x256xf32> to vector<16xf32>
      %20 = vector.shape_cast %19 : vector<16xf32> to vector<16x1xf32>
      %cst_12 = arith.constant 2.560000e+02 : f32
      %21 = vector.broadcast %cst_12 : f32 to vector<16x1xf32>
      %22 = arith.divf %20, %21 : vector<16x1xf32>
      %cst_13 = arith.constant 9.99999997E-7 : f32
      %23 = vector.broadcast %cst_13 : f32 to vector<16x1xf32>
      %24 = arith.addf %22, %23 : vector<16x1xf32>
      %25 = math.rsqrt %24 : vector<16x1xf32>
      %26 = vector.broadcast %25 : vector<16x1xf32> to vector<16x256xf32>
      %27 = arith.mulf %17, %26 : vector<16x256xf32>
      %c0_14 = arith.constant 0 : index
      %c0_15 = arith.constant 0 : index
      %28 = vector.load %arg2[%c0_14, %c0_15] : memref<1x256xf32, #tpu.memory_space<vmem>>, vector<1x256xf32>
      %29 = vector.broadcast %28 : vector<1x256xf32> to vector<16x256xf32>
      %30 = arith.mulf %27, %29 : vector<16x256xf32>
      %31 = arith.truncf %30 : vector<16x256xf32> to vector<16x256xbf16>
      %c0_16 = arith.constant 0 : index
      %c0_17 = arith.constant 0 : index
      %32 = vector.load %arg6[%c0_16, %c0_17] : memref<16x256xbf16, #tpu.memory_space<vmem>>, vector<16x256xbf16>
      tpu.vector_store %arg6[%c0_16, %c0_17], %31 {strides = array<i32>} : memref<16x256xbf16, #tpu.memory_space<vmem>>, vector<16x256xbf16>,
      %cst_18 = arith.constant 0xFF800000 : f32
      %33 = vector.broadcast %cst_18 : f32 to vector<16x128xf32>
      %c0_19 = arith.constant 0 : index
      %c0_20 = arith.constant 0 : index
      %34 = vector.load %arg7[%c0_19, %c0_20] : memref<16x128xf32, #tpu.memory_space<vmem>>, vector<16x128xf32>
      tpu.vector_store %arg7[%c0_19, %c0_20], %33 {strides = array<i32>} : memref<16x128xf32, #tpu.memory_space<vmem>>, vector<16x128xf32>,
      %c0_i32_21 = arith.constant 0 : i32
      %35 = vector.broadcast %c0_i32_21 : i32 to vector<16x128xi32>
      %c0_22 = arith.constant 0 : index
      %c0_23 = arith.constant 0 : index
      %36 = vector.load %arg8[%c0_22, %c0_23] : memref<16x128xi32, #tpu.memory_space<vmem>>, vector<16x128xi32>
      tpu.vector_store %arg8[%c0_22, %c0_23], %35 {strides = array<i32>} : memref<16x128xi32, #tpu.memory_space<vmem>>, vector<16x128xi32>,
    } else {
    }
    %c0 = arith.constant 0 : index
    %c0_1 = arith.constant 0 : index
    %3 = vector.load %arg6[%c0, %c0_1] : memref<16x256xbf16, #tpu.memory_space<vmem>>, vector<16x256xbf16>
    %c0_2 = arith.constant 0 : index
    %c0_3 = arith.constant 0 : index
    %4 = vector.load %arg4[%c0_2, %c0_3] : memref<256x256xbf16, #tpu.memory_space<vmem>>, vector<256x256xbf16>
    %cst = arith.constant dense<0.000000e+00> : vector<16x256xf32>
    %5 = tpu.matmul %3, %4, %cst {dimension_numbers = #tpu.dot_dimension_numbers<[1], [0], [0], [1], [0, 0, 1, 1], [], []>} : vector<16x256xbf16>, vector<256x256xbf16>, vector<16x256xf32> -> vector<16x256xf32>
    %6 = tpu.iota {dimensions = array<i32: 1>} : vector<16x128xi32>
    %c2_i32 = arith.constant 2 : i32
    %7 = arith.cmpi ne, %arg1, %c2_i32 : i32
    %8 = arith.extui %7 : i1 to i32
    %c0_i32_4 = arith.constant 0 : i32
    %9 = arith.cmpi ne, %8, %c0_i32_4 : i32
    scf.if %9 {
      %c0_9 = arith.constant 0 : index
      %c0_10 = arith.constant 0 : index
      %16 = vector.load %arg7[%c0_9, %c0_10] : memref<16x128xf32, #tpu.memory_space<vmem>>, vector<16x128xf32>
      %c0_11 = arith.constant 0 : index
      %c0_12 = arith.constant 0 : index
      %17 = vector.load %arg8[%c0_11, %c0_12] : memref<16x128xi32, #tpu.memory_space<vmem>>, vector<16x128xi32>
      %18 = vector.extract_strided_slice %5 {offsets = [0, 0], sizes = [16, 128], strides = [1, 1]} : vector<16x256xf32> to vector<16x128xf32>
      %c256_i32 = arith.constant 256 : i32
      %19 = arith.muli %arg1, %c256_i32 : i32
      %c0_i32_13 = arith.constant 0 : i32
      %20 = arith.addi %19, %c0_i32_13 : i32
      %21 = vector.broadcast %20 : i32 to vector<16x128xi32>
      %22 = arith.addi %6, %21 : vector<16x128xi32>
      %23 = arith.cmpf ogt, %18, %16 : vector<16x128xf32>
      %24 = arith.select %23, %22, %17 : vector<16x128xi1>, vector<16x128xi32>
      %25 = arith.select %23, %18, %16 : vector<16x128xi1>, vector<16x128xf32>
      %26 = vector.extract_strided_slice %5 {offsets = [0, 128], sizes = [16, 128], strides = [1, 1]} : vector<16x256xf32> to vector<16x128xf32>
      %c256_i32_14 = arith.constant 256 : i32
      %27 = arith.muli %arg1, %c256_i32_14 : i32
      %c128_i32 = arith.constant 128 : i32
      %28 = arith.addi %27, %c128_i32 : i32
      %29 = vector.broadcast %28 : i32 to vector<16x128xi32>
      %30 = arith.addi %6, %29 : vector<16x128xi32>
      %31 = arith.cmpf ogt, %26, %25 : vector<16x128xf32>
      %32 = arith.select %31, %30, %24 : vector<16x128xi1>, vector<16x128xi32>
      %33 = arith.select %31, %26, %25 : vector<16x128xi1>, vector<16x128xf32>
      %c0_15 = arith.constant 0 : index
      %c0_16 = arith.constant 0 : index
      %34 = vector.load %arg7[%c0_15, %c0_16] : memref<16x128xf32, #tpu.memory_space<vmem>>, vector<16x128xf32>
      tpu.vector_store %arg7[%c0_15, %c0_16], %33 {strides = array<i32>} : memref<16x128xf32, #tpu.memory_space<vmem>>, vector<16x128xf32>,
      %c0_17 = arith.constant 0 : index
      %c0_18 = arith.constant 0 : index
      %35 = vector.load %arg8[%c0_17, %c0_18] : memref<16x128xi32, #tpu.memory_space<vmem>>, vector<16x128xi32>
      tpu.vector_store %arg8[%c0_17, %c0_18], %32 {strides = array<i32>} : memref<16x128xi32, #tpu.memory_space<vmem>>, vector<16x128xi32>,
    } else {
    }
    %c2_i32_5 = arith.constant 2 : i32
    %10 = arith.cmpi eq, %arg1, %c2_i32_5 : i32
    %11 = arith.extui %10 : i1 to i32
    %c0_i32_6 = arith.constant 0 : i32
    %12 = arith.cmpi ne, %11, %c0_i32_6 : i32
    scf.if %12 {
      %c0_9 = arith.constant 0 : index
      %c0_10 = arith.constant 0 : index
      %16 = vector.load %arg7[%c0_9, %c0_10] : memref<16x128xf32, #tpu.memory_space<vmem>>, vector<16x128xf32>
      %c0_11 = arith.constant 0 : index
      %c0_12 = arith.constant 0 : index
      %17 = vector.load %arg8[%c0_11, %c0_12] : memref<16x128xi32, #tpu.memory_space<vmem>>, vector<16x128xi32>
      %18 = vector.extract_strided_slice %5 {offsets = [0, 0], sizes = [16, 128], strides = [1, 1]} : vector<16x256xf32> to vector<16x128xf32>
      %c256_i32 = arith.constant 256 : i32
      %19 = arith.muli %arg1, %c256_i32 : i32
      %c0_i32_13 = arith.constant 0 : i32
      %20 = arith.addi %19, %c0_i32_13 : i32
      %21 = vector.broadcast %20 : i32 to vector<16x128xi32>
      %22 = arith.addi %6, %21 : vector<16x128xi32>
      %23 = arith.cmpf ogt, %18, %16 : vector<16x128xf32>
      %c640_i32 = arith.constant 640 : i32
      %24 = vector.broadcast %c640_i32 : i32 to vector<16x128xi32>
      %25 = arith.cmpi slt, %22, %24 : vector<16x128xi32>
      %26 = arith.andi %23, %25 : vector<16x128xi1>
      %27 = arith.select %26, %22, %17 : vector<16x128xi1>, vector<16x128xi32>
      %28 = arith.select %26, %18, %16 : vector<16x128xi1>, vector<16x128xf32>
      %29 = vector.extract_strided_slice %5 {offsets = [0, 128], sizes = [16, 128], strides = [1, 1]} : vector<16x256xf32> to vector<16x128xf32>
      %c256_i32_14 = arith.constant 256 : i32
      %30 = arith.muli %arg1, %c256_i32_14 : i32
      %c128_i32 = arith.constant 128 : i32
      %31 = arith.addi %30, %c128_i32 : i32
      %32 = vector.broadcast %31 : i32 to vector<16x128xi32>
      %33 = arith.addi %6, %32 : vector<16x128xi32>
      %34 = arith.cmpf ogt, %29, %28 : vector<16x128xf32>
      %c640_i32_15 = arith.constant 640 : i32
      %35 = vector.broadcast %c640_i32_15 : i32 to vector<16x128xi32>
      %36 = arith.cmpi slt, %33, %35 : vector<16x128xi32>
      %37 = arith.andi %34, %36 : vector<16x128xi1>
      %38 = arith.select %37, %33, %27 : vector<16x128xi1>, vector<16x128xi32>
      %39 = arith.select %37, %29, %28 : vector<16x128xi1>, vector<16x128xf32>
      %c0_16 = arith.constant 0 : index
      %c0_17 = arith.constant 0 : index
      %40 = vector.load %arg7[%c0_16, %c0_17] : memref<16x128xf32, #tpu.memory_space<vmem>>, vector<16x128xf32>
      tpu.vector_store %arg7[%c0_16, %c0_17], %39 {strides = array<i32>} : memref<16x128xf32, #tpu.memory_space<vmem>>, vector<16x128xf32>,
      %c0_18 = arith.constant 0 : index
      %c0_19 = arith.constant 0 : index
      %41 = vector.load %arg8[%c0_18, %c0_19] : memref<16x128xi32, #tpu.memory_space<vmem>>, vector<16x128xi32>
      tpu.vector_store %arg8[%c0_18, %c0_19], %38 {strides = array<i32>} : memref<16x128xi32, #tpu.memory_space<vmem>>, vector<16x128xi32>,
    } else {
    }
    %c2_i32_7 = arith.constant 2 : i32
    %13 = arith.cmpi eq, %arg1, %c2_i32_7 : i32
    %14 = arith.extui %13 : i1 to i32
    %c0_i32_8 = arith.constant 0 : i32
    %15 = arith.cmpi ne, %14, %c0_i32_8 : i32
    scf.if %15 {
      %c0_9 = arith.constant 0 : index
      %c0_10 = arith.constant 0 : index
      %16 = vector.load %arg7[%c0_9, %c0_10] : memref<16x128xf32, #tpu.memory_space<vmem>>, vector<16x128xf32>
      %cst_11 = arith.constant dense<0xFF800000> : vector<16xf32>
      %17 = vector.multi_reduction <maximumf>, %16, %cst_11 [1] : vector<16x128xf32> to vector<16xf32>
      %18 = vector.shape_cast %17 : vector<16xf32> to vector<16x1xf32>
      %19 = vector.broadcast %18 : vector<16x1xf32> to vector<16x128xf32>
      %20 = arith.cmpf oeq, %16, %19 : vector<16x128xf32>
      %c0_12 = arith.constant 0 : index
      %c0_13 = arith.constant 0 : index
      %21 = vector.load %arg8[%c0_12, %c0_13] : memref<16x128xi32, #tpu.memory_space<vmem>>, vector<16x128xi32>
      %c2147483647_i32 = arith.constant 2147483647 : i32
      %22 = vector.broadcast %c2147483647_i32 : i32 to vector<16x128xi32>
      %23 = arith.select %20, %21, %22 : vector<16x128xi1>, vector<16x128xi32>
      %cst_14 = arith.constant dense<2147483647> : vector<16xi32>
      %24 = vector.multi_reduction <minsi>, %23, %cst_14 [1] : vector<16x128xi32> to vector<16xi32>
      %25 = vector.shape_cast %24 : vector<16xi32> to vector<16x1xi32>
      %c0_15 = arith.constant 0 : index
      %c0_16 = arith.constant 0 : index
      %26 = vector.load %arg5[%c0_15, %c0_16] : memref<16x1xi32, #tpu.memory_space<vmem>>, vector<16x1xi32>
      tpu.vector_store %arg5[%c0_15, %c0_16], %25 {strides = array<i32>} : memref<16x1xi32, #tpu.memory_space<vmem>>, vector<16x1xi32>,
    } else {
    }
    return
  }
  func.func @transform_0(%arg0: i32, %arg1: i32) -> (i32, i32) {
    %c0_i32 = arith.constant 0 : i32
    %c0_i32_0 = arith.constant 0 : i32
    %c0_i32_1 = arith.constant 0 : i32
    return %c0_i32, %c0_i32_0 : i32, i32
  }
  func.func @transform_1(%arg0: i32, %arg1: i32) -> (i32, i32) {
    %c0_i32 = arith.constant 0 : i32
    %c0_i32_0 = arith.constant 0 : i32
    return %arg0, %c0_i32 : i32, i32
  }
  func.func @transform_2(%arg0: i32, %arg1: i32) -> (i32, i32) {
    %c0_i32 = arith.constant 0 : i32
    %c0_i32_0 = arith.constant 0 : i32
    return %c0_i32, %arg1 : i32, i32
  }
  func.func @transform_3(%arg0: i32, %arg1: i32) -> (i32, i32) {
    %c0_i32 = arith.constant 0 : i32
    %c0_i32_0 = arith.constant 0 : i32
    return %arg0, %c0_i32 : i32, i32
  }
}

</mosaic_0001>

<bundles_post_ra>
// kernel: tpu_custom_call.1
= control target key start
LH: loop header
LB: loop body
LE: loop exit
PB: predicated region body
PF: predicated region fallthrough
CT: control target
= control target key end

     0   :  { %8 = vsyncpa [#allocation6], 0  ;;  %s1379_s0 = inlined_call_operand.hbm [shape: f32[1,256], index: 0, kind: input, shape index: {}]   ;;  %s1380_s1 = inlined_call_operand.hbm [shape: bf16[16,256], index: 1, kind: input, shape index: {}]   ;;  %s1381_s2 = inlined_call_operand.hbm [shape: bf16[256,640], index: 2, kind: input, shape index: {}]   ;;  %s1382_s3 = inlined_call_operand.vmem [shape: s32[16,1], index: 3, kind: output, shape index: {}]  }
   0x1   :  { %9 = vsyncpa [#allocation8], 0  ;;  %s1110_s12 = smov 0   ;;  %s1112_s13 = smov 0  }
   0x2   :  { %s1114_s14 = smov 0   ;;  %s1116_s15 = smov 0  }
   0x3   :  { %s1118_s16 = smov 0   ;;  %s1120_s17 = smov 0  }
   0x4 LB: > { %s748_s18 = sadd.s32 4294967295, %s1079_s17   ;;  %s24_s19 = sadd.s32 1, %s1075_s16  ;;  %s1079_s17 = sphi %s1120_s17, %s15_s17   ;;  %s1075_s16 = sphi %s1118_s16, %s1404_s16   ;;  %s1071_s15 = sphi %s1116_s15, %s1403_s15   ;;  %s1067_s14 = sphi %s1114_s14, %s1402_s14   ;;  %s1063_s13 = sphi %s1112_s13, %s1401_s13   ;;  %s1059_s12 = sphi %s1110_s12, %s1400_s12  }
   0x5   : > { %p25_p0 = scmp.ge.s32.totalorder %s24_s19, 3  ;;  %s81_s20 = sadd.s32 1, %s1067_s14 }
   0x6   : > { %p88_p1 = scmp.ne.s32.totalorder %s1067_s14, %s1063_s13  ;;  %p89_p2 = scmp.eq.s32.totalorder %s1079_s17, 0 }
   0x7   : > { %s1406_s19 = smov (%p25_p0, %s24_s19), 0  ;;  %p94_p4 = scmp.ne.s32.totalorder %s1063_s13, %s1059_s12 }
   0x8   : > { %p1146_p3 = por %p89_p2, %p88_p1  ;;  %s78_s22 = ssub.s32 %s1075_s16, %s1406_s19 }
   0x9   : > { %p1155_p5 = scmp.eq.s32.totalorder %s748_s18, 0  ;;  %p79_p6 = scmp.eq.s32.totalorder %s78_s22, 0 }
   0xa   : > { %s1387_s21 = scalar_select %p1146_p3, 1, 0 }
   0xb   : > { %s1388_s23 = scalar_select %p1155_p5, 1, 0 }
   0xc   : > { %p749_p7 = scmp.ge.s32.totalorder %s1079_s17, 1  ;;  %p1162_p8 = por %p1155_p5, %p94_p4 }
   0xd   : > { %p131_p9 = scmp.lt.s32.totalorder %s1079_s17, 4  ;;  %s1081_s27 = smov [#allocation5]  }
   0xe   : > { %s1389_s24 = scalar_select %p1162_p8, 1, 0 }
   0xf   : > { %s1168_s25 = scalar_select %p79_p6, %s1067_s14, %s81_s20  }
  0x10   : > { %p1170_p10 = pnand %p749_p7, %p131_p9  ;;  %s144_s28 = sshll.u32 %s1081_s27, 4  ;;  %s145_s28 = int_to_ptr.vmem [resolvable:$true] %s144_s28 }
  0x11   : > { %s1082_s29 = smov [#allocation7]   ;;  %s937_s7 = scalar_lea.hbm %s1379_s0, 32 }
  0x12   : > { %s1390_s26 = scalar_select %p1170_p10, 1, 0 }
  0x13   : > { %p818_p11 = pneg %p1170_p10  ;;  %s158_s30 = sshll.u32 %s1082_s29, 4  ;;  %s1182_s30 = int_to_ptr.vmem [resolvable:$true] %s158_s30 }
  0x14   : > { %p938_p13 = scmp.ne.s32.totalorder %s1379_s0, %s937_s7  ;;  %p944_p4 = scmp.lt.u32.totalorder %s937_s7, %s1379_s0 }
  0x15   : > { %p1178_p12 = pnand %p818_p11, %p1155_p5 }
  0x17   : > { %p939_p0 = pneg %p1178_p12 }
  0x19   : > { %p940_p1 = pnand %p939_p0, %p938_p13 }
  0x1b   : > { %p941_p2 = pneg %p940_p1 }
  0x1d   : > { %p946_p6 = pnand %p944_p4, %p941_p2 }
  0x1f   : > { %949 = shalt.err (!%p946_p6)
}
  0x20   : > { %s950_s12 = scalar_lea.vmem %s145_s28, 32  ;;  %p958_p8 = scmp.lt.s32.totalorder %s145_s28, %s145_s28 }
  0x21   : > { %p951_p7 = scmp.ne.s32.totalorder %s145_s28, %s950_s12  ;;  %p959_p5 = scmp.lt.s32.totalorder %s950_s12, %s950_s12 }
  0x23   : > { %p953_p9 = pnand %p951_p7, %p939_p0  ;;  %p960_p10 = por %p959_p5, %p958_p8 }
  0x25   : > { %p954_p11 = pneg %p953_p9 }
  0x27   : > { %p961_p3 = pnand %p960_p10, %p954_p11 }
  0x29   : > { %964 = shalt.err (!%p961_p3)
}
  0x2a   : > { %821 = dma.hbm_to_vmem [thread:$0]  (!%p1178_p12), %s1379_s0, 32, %s145_s28, [#allocation6]  }
  0x2b   : > { %s965_s5 = scalar_lea.hbm %s1380_s1, 256 }
  0x2c   : > { %p966_p13 = scmp.ne.s32.totalorder %s1380_s1, %s965_s5  ;;  %p972_p3 = scmp.lt.u32.totalorder %s965_s5, %s1380_s1 }
  0x2e   : > { %p968_p5 = pnand %p966_p13, %p939_p0 }
  0x30   : > { %p969_p8 = pneg %p968_p5 }
  0x32   : > { %p974_p10 = pnand %p972_p3, %p969_p8 }
  0x34   : > { %977 = shalt.err (!%p974_p10)
}
  0x35   : > { %s978_s28 = scalar_lea.vmem %s1182_s30, 256  ;;  %p986_p6 = scmp.lt.s32.totalorder %s1182_s30, %s1182_s30 }
  0x36   : > { %p979_p1 = scmp.ne.s32.totalorder %s1182_s30, %s978_s28  ;;  %p987_p7 = scmp.lt.s32.totalorder %s978_s28, %s978_s28 }
  0x38   : > { %p981_p2 = pnand %p979_p1, %p939_p0  ;;  %p988_p9 = por %p987_p7, %p986_p6 }
  0x3a   : > { %p982_p4 = pneg %p981_p2 }
  0x3c   : > { %p989_p11 = pnand %p988_p9, %p982_p4 }
  0x3e   : > { %992 = shalt.err (!%p989_p11)
}
  0x3f   : > { %s1083_s10 = smov 128   ;;  %s1084_s11 = smov 8  }
  0x40   : > { %824 = dma.hbm_to_vmem [thread:$0]  (!%p1178_p12), %s1380_s1, 256, %s1182_s30, [#allocation8], %s1083_s10, %s1083_s10, %s1084_s11  }
  0x41   : > { %p752_p13 = scmp.ge.s32.totalorder %s1079_s17, 3 }
  0x42   : > { %p1392_p0 = scmp.ne.s32.totalorder (!%p752_p13), %s1387_s21, 0 }
  0x43   : > { %168 = sbr.rel (%p752_p13) target bundleno = 109 (0x6d), region = 24 }
  0x4a   : > { %171 = sbr.rel (!%p1392_p0) target bundleno = 109 (0x6d), region = 28  ;;  %s172_s22 = sand.u32 (%p1392_p0), 1, %s1079_s17  }
  0x4b   : > { %s174_s27 = sand.u32 (%p1392_p0), 1, %s1067_s14   ;;  %s754_s5 = sshll.u32 (%p1392_p0), %s1075_s16, 1 }
  0x4c   : > { %s753_s29 = sshll.u32 (%p1392_p0), %s174_s27, 8  ;;  %s178_s6 = ssub.s32 (%p1392_p0), 5, %s754_s5 }
  0x4d   : > { %p179_p5 = scmp.lt.s32.totalorder (%p1392_p0), %s178_s6, 2  ;;  %s1243_s7 = scalar_lea.sflag (%p1392_p0), [#allocation6], %s172_s22 }
  0x4e   : > { %s176_s21 = scalar_lea.vmem (%p1392_p0), [#allocation9], %s753_s29 }
  0x51   : > { %s1408_s6 = smov (!%p179_p5, %s178_s6), 2 }
  0x52   : > { %s1240_s4 = sshll.u32 %s1408_s6, 11 }
  0x53   : > { %s183_s30 = ssub.s32 4096, %s1240_s4 }
  0x54   : > { %184 = vsyncadd %s1243_s7, %s183_s30  ;;  %p756_p12 = scmp.ne.s32.totalorder %s1240_s4, 0  ;;  %s806_s8 = sshll.u32 %s1075_s16, 7 }
  0x55   : > { %s1251_s10 = scalar_lea.hbm %s1381_s2, %s806_s8  ;;  %s758_s11 = sshll.u32 %s1408_s6, 2 }
  0x56   : > { %s190_s12 = sshll.u32 %s176_s21, 4  ;;  %s993_s20 = scalar_lea.hbm %s1251_s10, %s1240_s4  ;;  %s1254_s12 = int_to_ptr.vmem [resolvable:$true] %s190_s12 }
  0x57   : > { %p994_p8 = scmp.ne.s32.totalorder %s1251_s10, %s993_s20  ;;  %s997_s29 = scalar_lea.hbm %s1381_s2, 10240 }
  0x58   : > { %p998_p1 = scmp.lt.u32.totalorder %s1251_s10, %s1381_s2  ;;  %p999_p2 = scmp.lt.u32.totalorder %s997_s29, %s993_s20 }
  0x59   : > { %p995_p3 = pnand %p994_p8, %p756_p12  ;;  %p1001_p6 = scmp.lt.u32.totalorder %s993_s20, %s1251_s10 }
  0x5a   : > { %p1000_p4 = por %p999_p2, %p998_p1 }
  0x5b   : > { %p996_p10 = pneg %p995_p3 }
  0x5c   : > { %p1002_p7 = por %p1001_p6, %p1000_p4 }
  0x5e   : > { %p1003_p9 = pnand %p1002_p7, %p996_p10 }
  0x60   : > { %1006 = shalt.err (!%p1003_p9)
}
  0x61   : > { %s1007_s21 = scalar_lea.vmem %s1254_s12, %s1240_s4  ;;  %s1085_s8 = smov [#allocation9]  }
  0x62   : > { %p1008_p11 = scmp.ne.s32.totalorder %s1254_s12, %s1007_s21  ;;  %s1011_s9 = sshll.u32 %s1085_s8, 4  ;;  %s1012_s9 = int_to_ptr.vmem [resolvable:$false] %s1011_s9 }
  0x63   : > { %s1013_s28 = scalar_lea.vmem %s1012_s9, 8192  ;;  %p1014_p5 = scmp.lt.s32.totalorder %s1254_s12, %s1012_s9 }
  0x64   : > { %p1009_p13 = pnand %p1008_p11, %p756_p12  ;;  %p1015_p8 = scmp.lt.s32.totalorder %s1013_s28, %s1007_s21 }
  0x66   : > { %p1010_p0 = pneg %p1009_p13  ;;  %p1016_p3 = por %p1015_p8, %p1014_p5 }
  0x68   : > { %p1017_p1 = pnand %p1016_p3, %p1010_p0 }
  0x6a   : > { %1020 = shalt.err (!%p1017_p1)
}
  0x6b   : > { %s1086_s20 = smov 320   ;;  %s1087_s22 = smov 128  }
  0x6c   : > { %196 = dma.hbm_to_vmem [thread:$0]  (%p756_p12), %s1251_s10, %s1240_s4, %s1254_s12, %s1243_s7, %s1086_s20, %s1087_s22, %s758_s11  }
  0x6d PF: > { %p1393_p10 = scmp.ne.s32.totalorder %s1390_s26, 0 }
  0x6e   : > { %p1394_p2 = scmp.ne.s32.totalorder (!%p1393_p10), %s1388_s23, 0 }
  0x6f   : > { %202 = sbr.rel (%p1393_p10) target bundleno = 1040 (0x410), region = 32 }
  0x76   : > { %1046 = dma.done.wait (%p1394_p2), [#allocation6], 32  }
  0x77   : > { %1048 = vsyncadd (%p1394_p2), [#allocation6], 4294967264 }
  0x78   : > { %1050 = dma.done.wait (%p1394_p2), [#allocation8], 256  }
  0x79   : > { %1052 = vsyncadd (%p1394_p2), [#allocation8], 4294967040  ;;  %s212_s6 = sand.u32 1, %s748_s18   ;;  %s214_s4 = sand.u32 1, %s1063_s13  }
  0x7a   : > { %s764_s26 = sshll.u32 %s214_s4, 8  ;;  %s213_s7 = scalar_lea.sflag [#allocation6], %s212_s6 }
  0x7b   : > { %s1296_s10 = scalar_lea.vmem [#allocation9], %s764_s26  ;;  %p1395_p12 = scmp.ne.s32.totalorder %s1389_s24, 0 }
  0x7d   : > { %1054 = dma.done.wait (%p1395_p12), %s213_s7, 4096  }
  0x7e   : > { %1056 = vsyncadd (%p1395_p12), %s213_s7, 4294963200  ;;  %p765_p4 = scmp.ne.s32.totalorder %s1071_s15, 0 }
  0x7f   : > { %v255_v0 = vld [vmem:[#allocation7] sm:$0xff] (!%p765_p4)  ;;  %v256_v1 = vld [vmem:[#allocation7 + $0x8] sm:$0xff] (!%p765_p4)  ;;  %v1088_v12 = vmov (!%p765_p4), -inf   ;;  %v1089_v13 = vmov (!%p765_p4), 0   ;;  %v284_v19 = vlaneseq (!%p765_p4)  ;;  %v282_v25 = vld [vmem:[#allocation5] sm:$0x3] (!%p765_p4) }
  0x80   : > { %254 = sbr.rel (%p765_p4) target bundleno = 302 (0x12e), region = 48  ;;  %v257_v2 = vunpack.c.l.bf16 (!%p765_p4), %v255_v0  ;;  %v258_v3 = vunpack.c.h.bf16 (!%p765_p4), %v255_v0  ;;  %v259_v4 = vunpack.c.l.bf16 (!%p765_p4), %v256_v1  ;;  %v260_v5 = vunpack.c.h.bf16 (!%p765_p4), %v256_v1  ;;  %302 = vst [vmem:[#allocation3] sm:$0xff] (!%p765_p4), %v1088_v12  ;;  %303 = vst [vmem:[#allocation3 + $0x8] sm:$0xff] (!%p765_p4), %v1088_v12 }
  0x81   : > { %304 = vst [vmem:[#allocation4] sm:$0xff] (!%p765_p4), %v1089_v13  ;;  %305 = vst [vmem:[#allocation4 + $0x8] sm:$0xff] (!%p765_p4), %v1089_v13  ;;  %v285_v21 = vshrl.u32 (!%p765_p4), %v284_v19, 7 }
  0x82   : > { %v261_v6 = vmul.f32 (!%p765_p4), %v257_v2, %v257_v2  ;;  %v262_v7 = vmul.f32 (!%p765_p4), %v258_v3, %v258_v3  ;;  %v263_v8 = vmul.f32 (!%p765_p4), %v259_v4, %v259_v4  ;;  %v264_v9 = vmul.f32 (!%p765_p4), %v260_v5, %v260_v5 }
  0x83   : > { %v286_v22 = vsub.s32 (!%p765_p4), 0, %v285_v21  ;;  %v290_v23 = vsub.s32 (!%p765_p4), 1, %v285_v21 }
  0x84   : > { %v265_v10 = vadd.f32 (!%p765_p4), %v262_v7, %v261_v6  ;;  %v268_v11 = vadd.f32 (!%p765_p4), %v264_v9, %v263_v8 }
  0x85   : > { %v287_v26 = vrot.slane (!%p765_p4), %v282_v25, %v286_v22  ;;  %v291_v27 = vrot.slane (!%p765_p4), %v282_v25, %v290_v23 }
  0x86   : > { %266 = vadd.xlane.f32.xlu0 (!%p765_p4), %v265_v10 }
  0x8a   : > { %269 = vadd.xlane.f32.xlu0 %v268_v11 }
 0x113   : > { %v267_v14 = vpop.xlane.xlu0 %266 }
 0x114   : > { %v272_v15 = vmul.f32 0.00390625, %v267_v14 }
 0x116   : > { %v274_v16 = vadd.f32 1e-06, %v272_v15 }
 0x117   : > { %v270_v17 = vpop.xlane.xlu0 %269 }
 0x118   : > { %885 = vrsqrt.f32 %v274_v16  ;;  %v273_v18 = vmul.f32 0.00390625, %v270_v17 }
 0x11a   : > { %v275_v20 = vadd.f32 1e-06, %v273_v18 }
 0x11c   : > { %887 = vrsqrt.f32 %v275_v20 }
 0x122   : > { %v886_v24 = vpop.eup %885 }
 0x123   : > { %v278_v28 = vmul.f32 %v886_v24, %v257_v2  ;;  %v279_v29 = vmul.f32 %v886_v24, %v258_v3 }
 0x125   : > { %v294_v33 = vmul.f32 %v287_v26, %v278_v28  ;;  %v295_v34 = vmul.f32 %v291_v27, %v279_v29 }
 0x126   : > { %v888_v30 = vpop.eup %887 }
 0x127   : > { %v280_v31 = vmul.f32 %v888_v30, %v259_v4  ;;  %v281_v32 = vmul.f32 %v888_v30, %v260_v5 }
 0x129   : > { %v296_v35 = vmul.f32 %v287_v26, %v280_v31  ;;  %v297_v36 = vmul.f32 %v291_v27, %v281_v32 }
 0x12b   : > { %v298_v37 = vpack.c.bf16 %v296_v35, %v294_v33  ;;  %v299_v38 = vpack.c.bf16 %v297_v36, %v295_v34 }
 0x12d   : > { %300 = vst [vmem:[#allocation2] sm:$0xff] %v298_v37  ;;  %301 = vst [vmem:[#allocation2 + $0x8] sm:$0xff] %v299_v38 }
 0x12e PF: > { %v889_v39 = vld [vmem:[%s1296_s10 + $0x4] ss:$8 sps:$4 sm:$0xff]   ;;  %v891_v40 = vld [vmem:[%s1296_s10] ss:$8 sps:$4 sm:$0xff]   ;;  %v892_v41 = vld [vmem:[%s1296_s10 + $0x14] ss:$8 sps:$4 sm:$0xff]   ;;  %v543_v9 = vlaneseq }
 0x12f   : > { %500 = vmatprep.subr.bf16.mxu0 %v889_v39  ;;  %v894_v42 = vld [vmem:[%s1296_s10 + $0x10] ss:$8 sps:$4 sm:$0xff]   ;;  %v895_v43 = vld [vmem:[%s1296_s10 + $0x24] ss:$8 sps:$4 sm:$0xff]   ;;  %v897_v44 = vld [vmem:[%s1296_s10 + $0x20] ss:$8 sps:$4 sm:$0xff]  }
 0x130   : > { %501 = vmatpush1.bf16.msra.mxu0 %v891_v40  ;;  %v898_v45 = vld [vmem:[%s1296_s10 + $0x34] ss:$8 sps:$4 sm:$0xff]   ;;  %v900_v46 = vld [vmem:[%s1296_s10 + $0x30] ss:$8 sps:$4 sm:$0xff]   ;;  %v901_v47 = vld [vmem:[%s1296_s10 + $0x44] ss:$8 sps:$4 sm:$0xff]  }
 0x131   : > { %502 = vmatprep.subr.bf16.mxu0 %v892_v41  ;;  %v903_v48 = vld [vmem:[%s1296_s10 + $0x40] ss:$8 sps:$4 sm:$0xff]   ;;  %v904_v49 = vld [vmem:[%s1296_s10 + $0x54] ss:$8 sps:$4 sm:$0xff]   ;;  %v906_v50 = vld [vmem:[%s1296_s10 + $0x50] ss:$8 sps:$4 sm:$0xff]  }
 0x132   : > { %v907_v51 = vld [vmem:[%s1296_s10 + $0x64] ss:$8 sps:$4 sm:$0xff]   ;;  %v909_v53 = vld [vmem:[%s1296_s10 + $0x60] ss:$8 sps:$4 sm:$0xff]   ;;  %v910_v54 = vld [vmem:[%s1296_s10 + $0x74] ss:$8 sps:$4 sm:$0xff]  }
 0x133   : > { %v912_v55 = vld [vmem:[%s1296_s10 + $0x70] ss:$8 sps:$4 sm:$0xff]   ;;  %v913_v56 = vld [vmem:[%s1296_s10 + $0x84] ss:$8 sps:$4 sm:$0xff]   ;;  %v915_v57 = vld [vmem:[%s1296_s10 + $0x80] ss:$8 sps:$4 sm:$0xff]  }
 0x134   : > { %503 = vmatpush1.bf16.msra.mxu0 %v894_v42  ;;  %v307_v52 = vld [vmem:[#allocation2 + $0x8] sm:$0xff]  ;;  %v916_v58 = vld [vmem:[%s1296_s10 + $0x94] ss:$8 sps:$4 sm:$0xff]   ;;  %v918_v59 = vld [vmem:[%s1296_s10 + $0x90] ss:$8 sps:$4 sm:$0xff]   ;;  %v544_v10 = vand.u32 127, %v543_v9 }
 0x135   : > { %504 = vmatprep.subr.bf16.mxu0 %v895_v43  ;;  %532 = vmatprep.mubr.bf16.mxu0 %v307_v52  ;;  %v919_v60 = vld [vmem:[%s1296_s10 + $0xa4] ss:$8 sps:$4 sm:$0xff]   ;;  %v921_v61 = vld [vmem:[%s1296_s10 + $0xa0] ss:$8 sps:$4 sm:$0xff]   ;;  %v922_v62 = vld [vmem:[%s1296_s10 + $0xb4] ss:$8 sps:$4 sm:$0xff]  }
 0x136   : > { %v924_v63 = vld [vmem:[%s1296_s10 + $0xb0] ss:$8 sps:$4 sm:$0xff]   ;;  %v925_v0 = vld [vmem:[%s1296_s10 + $0xc4] ss:$8 sps:$4 sm:$0xff]   ;;  %v927_v1 = vld [vmem:[%s1296_s10 + $0xc0] ss:$8 sps:$4 sm:$0xff]  }
 0x137   : > { %v928_v2 = vld [vmem:[%s1296_s10 + $0xd4] ss:$8 sps:$4 sm:$0xff]   ;;  %v930_v3 = vld [vmem:[%s1296_s10 + $0xd0] ss:$8 sps:$4 sm:$0xff]   ;;  %v931_v4 = vld [vmem:[%s1296_s10 + $0xe4] ss:$8 sps:$4 sm:$0xff]  }
 0x138   : > { %505 = vmatpush1.bf16.msra.mxu0 %v897_v44  ;;  %v933_v5 = vld [vmem:[%s1296_s10 + $0xe0] ss:$8 sps:$4 sm:$0xff]   ;;  %v934_v6 = vld [vmem:[%s1296_s10 + $0xf4] ss:$8 sps:$4 sm:$0xff]   ;;  %v936_v7 = vld [vmem:[%s1296_s10 + $0xf0] ss:$8 sps:$4 sm:$0xff]  }
 0x139   : > { %506 = vmatprep.subr.bf16.mxu0 %v898_v45  ;;  %v306_v8 = vld [vmem:[#allocation2] sm:$0xff]  ;;  %p798_p6 = scmp.eq.s32.totalorder %s1071_s15, 2 }
 0x13a   : > { %v549_v15 = vld [vmem:[#allocation3] sm:$0xff] (!%p798_p6)  ;;  %v550_v16 = vld [vmem:[#allocation3 + $0x8] sm:$0xff] (!%p798_p6)  ;;  %s799_s18 = sshll.u32 (!%p798_p6), %s1071_s15, 8  ;;  %v551_v17 = vld [vmem:[#allocation4] sm:$0xff] (!%p798_p6) }
 0x13b   : > { %v554_v18 = vstv (!%p798_p6), %s799_s18  ;;  %s562_s23 = sadd.s32 (!%p798_p6), 128, %s799_s18  ;;  %v552_v19 = vld [vmem:[#allocation4 + $0x8] sm:$0xff] (!%p798_p6) }
 0x13c   : > { %507 = vmatpush1.bf16.msra.mxu0 %v900_v46  ;;  %v555_v22 = vadd.s32 (!%p798_p6), %v554_v18, %v544_v10  ;;  %v563_v23 = vstv (!%p798_p6), %s562_s23 }
 0x13d   : > { %508 = vmatprep.subr.bf16.mxu0 %v901_v47  ;;  %v564_v24 = vadd.s32 (!%p798_p6), %v563_v23, %v544_v10 }
 0x140   : > { %509 = vmatpush1.bf16.msra.mxu0 %v903_v48 }
 0x141   : > { %510 = vmatprep.subr.bf16.mxu0 %v904_v49 }
 0x144   : > { %511 = vmatpush1.bf16.msra.mxu0 %v906_v50 }
 0x145   : > { %512 = vmatprep.subr.bf16.mxu0 %v907_v51 }
 0x148   : > { %513 = vmatpush1.bf16.msra.mxu0 %v909_v53 }
 0x149   : > { %514 = vmatprep.subr.bf16.mxu0 %v910_v54 }
 0x14c   : > { %515 = vmatpush1.bf16.msra.mxu0 %v912_v55 }
 0x14d   : > { %516 = vmatprep.subr.bf16.mxu0 %v913_v56 }
 0x150   : > { %517 = vmatpush1.bf16.msra.mxu0 %v915_v57 }
 0x151   : > { %518 = vmatprep.subr.bf16.mxu0 %v916_v58 }
 0x154   : > { %519 = vmatpush1.bf16.msra.mxu0 %v918_v59 }
 0x155   : > { %520 = vmatprep.subr.bf16.mxu0 %v919_v60 }
 0x158   : > { %521 = vmatpush1.bf16.msra.mxu0 %v921_v61 }
 0x159   : > { %522 = vmatprep.subr.bf16.mxu0 %v922_v62 }
 0x15c   : > { %523 = vmatpush1.bf16.msra.mxu0 %v924_v63 }
 0x15d   : > { %524 = vmatprep.subr.bf16.mxu0 %v925_v0 }
 0x160   : > { %525 = vmatpush1.bf16.msra.mxu0 %v927_v1 }
 0x161   : > { %526 = vmatprep.subr.bf16.mxu0 %v928_v2 }
 0x164   : > { %527 = vmatpush1.bf16.msra.mxu0 %v930_v3 }
 0x165   : > { %528 = vmatprep.subr.bf16.mxu0 %v931_v4 }
 0x168   : > { %529 = vmatpush1.bf16.msra.mxu0 %v933_v5 }
 0x169   : > { %530 = vmatprep.subr.bf16.mxu0 %v934_v6 }
 0x16c   : > { %531 = vmatpush1.bf16.msra.mxu0 %v936_v7 }
 0x16f   : > { %533 = vmatmul.mubr.bf16.vlgmr.msra.gmra.mrb[0].mxu0 %v306_v8 }
 0x23f   : > { %548 = sbr.rel (%p798_p6) target bundleno = 586 (0x24a), region = 52 }
 0x242   : > { %v534_v11 = vpop.f32.mrb[0].mxu0 }
 0x243   : > { %v536_v12 = vpop.f32.mrb[1].mxu0  ;;  %vm556_vm0 = vcmp.gt.f32.partialorder (!%p798_p6), %v534_v11, %v549_v15 }
 0x244   : > { %v538_v13 = vpop.f32.mrb[2].mxu0  ;;  %v560_v20 = vsel (!%p798_p6), %vm556_vm0, %v534_v11, %v549_v15  ;;  %v558_v27 = vsel (!%p798_p6), %vm556_vm0, %v555_v22, %v551_v17 }
 0x245   : > { %v540_v14 = vpop.f32.mrb[3].mxu0  ;;  %vm557_vm1 = vcmp.gt.f32.partialorder (!%p798_p6), %v538_v13, %v550_v16  ;;  %vm565_vm2 = vcmp.gt.f32.partialorder (!%p798_p6), %v536_v12, %v560_v20 }
 0x246   : > { %v561_v21 = vsel %vm557_vm1, %v538_v13, %v550_v16  ;;  %v569_v25 = vsel %vm565_vm2, %v536_v12, %v560_v20  ;;  %v559_v28 = vsel %vm557_vm1, %v555_v22, %v552_v19  ;;  %v567_v29 = vsel %vm565_vm2, %v564_v24, %v558_v27 }
 0x247   : > { %vm566_vm3 = vcmp.gt.f32.partialorder %v540_v14, %v561_v21  ;;  %571 = vst [vmem:[#allocation3] sm:$0xff] %v569_v25  ;;  %573 = vst [vmem:[#allocation4] sm:$0xff] %v567_v29 }
 0x248   : > { %v570_v26 = vsel %vm566_vm3, %v540_v14, %v561_v21  ;;  %v568_v30 = vsel %vm566_vm3, %v564_v24, %v559_v28 }
 0x249   : > { %572 = vst [vmem:[#allocation3 + $0x8] sm:$0xff] %v570_v26  ;;  %574 = vst [vmem:[#allocation4 + $0x8] sm:$0xff] %v568_v30 }
 0x24a PF: > { %p800_p7 = scmp.ne.s32.totalorder %s1071_s15, 2 }
 0x24b   : > { %s801_s24 = sshll.u32 (!%p800_p7), %s1071_s15, 8  ;;  %vm651_vm2 = vcmask (!%p800_p7), 7168  }
 0x24c   : > { %578 = sbr.rel (%p800_p7) target bundleno = 1040 (0x410), region = 56  ;;  %v584_v33 = vstv (!%p800_p7), %s801_s24  ;;  %s595_s11 = sadd.s32 (!%p800_p7), 128, %s801_s24 }
 0x24d   : > { %v585_v34 = vadd.s32 (!%p800_p7), %v584_v33, %v544_v10  ;;  %v596_v35 = vstv (!%p800_p7), %s595_s11 }
 0x24e   : > { %v579_v31 = vld [vmem:[#allocation3] sm:$0xff] (!%p800_p7)  ;;  %v597_v36 = vadd.s32 (!%p800_p7), %v596_v35, %v544_v10  ;;  %v581_v43 = vld [vmem:[#allocation4] sm:$0xff] (!%p800_p7) }
 0x24f   : > { %vm586_vm4 = vcmp.gt.f32.partialorder (!%p800_p7), %v534_v11, %v579_v31  ;;  %vm588_vm6 = vcmp.lt.s32.totalorder (!%p800_p7), %v585_v34, 640 }
 0x250   : > { %v580_v32 = vld [vmem:[#allocation3 + $0x8] sm:$0xff] (!%p800_p7)  ;;  %vm1339_vm7 = vmand (!%p800_p7), %vm586_vm4, %vm588_vm6  ;;  %vm600_vm8 = vcmp.lt.s32.totalorder (!%p800_p7), %v597_v36, 640  ;;  %v582_v46 = vld [vmem:[#allocation4 + $0x8] sm:$0xff] (!%p800_p7) }
 0x251   : > { %vm587_vm5 = vcmp.gt.f32.partialorder (!%p800_p7), %v538_v13, %v580_v32  ;;  %v593_v38 = vsel (!%p800_p7), %vm1339_vm7, %v534_v11, %v579_v31  ;;  %v591_v44 = vsel (!%p800_p7), %vm1339_vm7, %v585_v34, %v581_v43 }
 0x252   : > { %vm1345_vm9 = vmand (!%p800_p7), %vm587_vm5, %vm588_vm6  ;;  %vm598_vm10 = vcmp.gt.f32.partialorder (!%p800_p7), %v536_v12, %v593_v38 }
 0x253   : > { %v594_v40 = vsel %vm1345_vm9, %v538_v13, %v580_v32  ;;  %vm601_vm11 = vmand %vm598_vm10, %vm600_vm8  ;;  %v592_v47 = vsel %vm1345_vm9, %v585_v34, %v582_v46 }
 0x254   : > { %vm599_vm12 = vcmp.gt.f32.partialorder %v540_v14, %v594_v40  ;;  %v605_v41 = vsel %vm601_vm11, %v536_v12, %v593_v38  ;;  %v603_v45 = vsel %vm601_vm11, %v597_v36, %v591_v44 }
 0x255   : > { %vm602_vm13 = vmand %vm599_vm12, %vm600_vm8  ;;  %607 = vst [vmem:[#allocation3] sm:$0xff] %v605_v41  ;;  %613 = vmax.xlane.f32.xlu0 %v605_v41 }
 0x256   : > { %v606_v42 = vsel %vm602_vm13, %v540_v14, %v594_v40  ;;  %609 = vst [vmem:[#allocation4] sm:$0xff] %v603_v45  ;;  %v604_v48 = vsel %vm602_vm13, %v597_v36, %v592_v47 }
 0x257   : > { %608 = vst [vmem:[#allocation3 + $0x8] sm:$0xff] %v606_v42  ;;  %610 = vst [vmem:[#allocation4 + $0x8] sm:$0xff] %v604_v48 }
 0x259   : > { %615 = vmax.xlane.f32.xlu0 %v606_v42 }
 0x2e2   : > { %v614_v49 = vpop.xlane.xlu0 %613 }
 0x2e3   : > { %vm617_vm14 = vcmp.eq.f32.partialorder %v605_v41, %v614_v49 }
 0x2e4   : > { %v621_v50 = vsel %vm617_vm14, %v603_v45, 2147483647 }
 0x2e5   : > { %v624_v51 = vshra.s32 %v621_v50, 16  ;;  %v623_v57 = vand.u32 65535, %v621_v50 }
 0x2e6   : > { %v616_v52 = vpop.xlane.xlu0 %615 }
 0x2e7   : > { %vm618_vm15 = vcmp.eq.f32.partialorder %v606_v42, %v616_v52  ;;  %v626_v53 = vcvt.s32.f32 %v624_v51  ;;  %v625_v60 = vcvt.s32.f32 %v623_v57 }
 0x2e8   : > { %v622_v54 = vsel %vm618_vm15, %v604_v48, 2147483647 }
 0x2e9   : > { %627 = vmin.xlane.f32.xlu1 %v626_v53  ;;  %v638_v55 = vshra.s32 %v622_v54, 16  ;;  %v637_v58 = vand.u32 65535, %v622_v54 }
 0x2eb   : > { %v640_v56 = vcvt.s32.f32 %v638_v55  ;;  %v639_v63 = vcvt.s32.f32 %v637_v58 }
 0x2ed   : > { %641 = vmin.xlane.f32.xlu1 %v640_v56 }
 0x376   : > { %v628_v59 = vpop.xlane.xlu1 %627 }
 0x377   : > { %vm629_vm0 = vcmp.eq.f32.partialorder %v626_v53, %v628_v59  ;;  %v634_v1 = vcvt.f32.s32 %v628_v59 }
 0x378   : > { %v630_v61 = vsel %vm629_vm0, %v625_v60, inf }
 0x379   : > { %631 = vmin.xlane.f32.xlu0 %v630_v61  ;;  %v635_v3 = vshll.u32 %v634_v1, 16 }
 0x37a   : > { %v642_v62 = vpop.xlane.xlu1 %641 }
 0x37b   : > { %vm643_vm1 = vcmp.eq.f32.partialorder %v640_v56, %v642_v62  ;;  %v648_v4 = vcvt.f32.s32 %v642_v62 }
 0x37c   : > { %v644_v0 = vsel %vm643_vm1, %v639_v63, inf }
 0x37d   : > { %645 = vmin.xlane.f32.xlu1 %v644_v0  ;;  %v649_v8 = vshll.u32 %v648_v4, 16 }
 0x406   : > { %v632_v2 = vpop.xlane.xlu0 %631 }
 0x407   : > { %v633_v5 = vcvt.f32.s32 %v632_v2 }
 0x409   : > { %v636_v6 = vadd.s32 %v635_v3, %v633_v5 }
 0x40a   : > { %v646_v7 = vpop.xlane.xlu1 %645 }
 0x40b   : > { %652 = vst.msk [vmem:[%s1382_s3] sm:$0xff] %vm651_vm2, %v636_v6  ;;  %v647_v9 = vcvt.f32.s32 %v646_v7 }
 0x40d   : > { %v650_v10 = vadd.s32 %v649_v8, %v647_v9 }
 0x40f   : > { %653 = vst.msk [vmem:[%s1382_s3 + $0x8] sm:$0xff] %vm651_vm2, %v650_v10 }
 0x410 PF: > { %s15_s17 = sadd.s32 1, %s1079_s17   ;;  %s1400_s12 = smov %s1063_s13 }
 0x411   : > { %p12_p9 = scmp.ge.s32.totalorder %s15_s17, 5   ;;  %s1401_s13 = smov %s1067_s14 }
 0x412   : > { %s1402_s14 = smov %s1168_s25  ;;  %s1403_s15 = smov %s1075_s16 }
 0x413   : > { %s1404_s16 = smov %s1406_s19  ;;  %14 = sbr.rel (!%p12_p9) target bundleno = 4 (0x4), region = 92 }
 0x41a   :  { %676 = vsyncpa [#allocation6], 1 }
 0x41b   :  { %678 = vsyncpa [#allocation6 + $0x1], 1 }
 0x41c   :  { %679 = vsyncpa [#allocation8], 1 }

</bundles_post_ra>
